<compile_context>
chip_gen: v7x
topology: tpu7x:2x2x1
jax: 0.10.0
libtpu: 0.0.40
codegen_flags: <defaults>
</compile_context>

<pallas_src>
import jax
import jax.numpy as jnp
from jax import lax
from jax.experimental import pallas as pl
from jax.experimental.pallas import tpu as pltpu


# ----------------------------------------------------------------------------
# One-off probe: determine pltpu.roll's rotation convention on this build.
# Returns sign s such that pltpu.roll(x, shift=(s*off) % n, axis=-1)[p] == x[(p+off) % n].
# ----------------------------------------------------------------------------
_ROLL_SIGN = None


def _get_roll_sign():
    global _ROLL_SIGN
    if _ROLL_SIGN is None:
        def probe(x_ref, o_ref):
            o_ref[...] = pltpu.roll(x_ref[...], shift=1, axis=1)

        x = lax.broadcasted_iota(jnp.float32, (8, 128), 1)   # x[r, c] = c
        y = pl.pallas_call(
            probe, out_shape=jax.ShapeDtypeStruct((8, 128), jnp.float32))(x)
        # jnp.roll convention (out[i] = x[i - shift]) -> y[0, 0] == 127.
        _ROLL_SIGN = -1 if float(y[0, 0]) > 64.0 else 1
    return _ROLL_SIGN


# ----------------------------------------------------------------------------
# Fused DnCNN kernel: all layers in one grid step, activations in vregs.
# ----------------------------------------------------------------------------
def _make_dncnn_kernel(H, W, C, F, depth, compute_dtype, roll_sign):
    HW = H * W
    n_mid = depth - 2

    def kernel(x_ref, w0_ref, b0_ref, wm_ref, bm_ref, wl_ref, bl_ref, o_ref):
        # Border-validity masks, shape (1, HW), broadcast over channel sublanes.
        pos = lax.broadcasted_iota(jnp.int32, (1, HW), 1)
        row, col = pos // W, pos % W
        row_ok = {-1: row >= 1, 0: None, 1: row <= H - 2}
        col_ok = {-1: col >= 1, 0: None, 1: col <= W - 2}
        masks = {}
        for dy in (-1, 0, 1):
            for dx in (-1, 0, 1):
                r, c = row_ok[dy], col_ok[dx]
                if r is None:
                    masks[(dy, dx)] = c
                elif c is None:
                    masks[(dy, dx)] = r
                else:
                    masks[(dy, dx)] = jnp.logical_and(r, c)

        def conv3x3(act_f32, w_taps):
            # act_f32: (Cin, HW) f32.  w_taps: (9*Cout, Cin) bf16, rows
            # [k*Cout:(k+1)*Cout] = tap k weight (Cout, Cin).
            cout = w_taps.shape[0] // 9
            acc = jnp.zeros((cout, HW), jnp.float32)
            for ky in range(3):
                for kx in range(3):
                    dy, dx = ky - 1, kx - 1
                    off = dy * W + dx
                    tap = act_f32
                    if off != 0:
                        tap = pltpu.roll(tap, shift=(roll_sign * off) % HW, axis=1)
                    m = masks[(dy, dx)]
                    if m is not None:
                        tap = jnp.where(m, tap, 0.0)          # zero "SAME" border
                    k = ky * 3 + kx
                    acc = acc + jnp.dot(
                        w_taps[k * cout:(k + 1) * cout, :],
                        tap.astype(compute_dtype),
                        preferred_element_type=jnp.float32)
            return acc                                        # (Cout, HW) f32

        x_f32 = x_ref[0].astype(jnp.float32)                  # (C, HW)

        # Layer 0: Conv3x3(C->F) + ReLU.
        h = jnp.maximum(conv3x3(x_f32, w0_ref[...]) + b0_ref[...], 0.0)

        # Middle layers: Conv3x3(F->F) + folded BN (eval) + ReLU.
        def mid_body(li, carry):
            y = conv3x3(carry, wm_ref[li]) + bm_ref[li]
            return jnp.maximum(y, 0.0)

        h = lax.fori_loop(0, n_mid, mid_body, h)

        # Last layer: Conv3x3(F->C); DnCNN residual: clean = x - noise.
        noise = conv3x3(h, wl_ref[...]) + bl_ref[...]
        o_ref[0] = (x_f32 - noise).astype(o_ref.dtype)        # lane-dense store

    return kernel


# ----------------------------------------------------------------------------
# Host-side weight packing: HWIO (3,3,cin,cout) -> (9*cout, cin) bf16 per layer.
# ----------------------------------------------------------------------------
def _pack_params(params, compute_dtype):
    depth = len(params)

    def taps_2d(w):
        cin, cout = w.shape[2], w.shape[3]
        # rows [k*cout:(k+1)*cout] hold tap k as (cout, cin), k = ky*3 + kx.
        return jnp.transpose(w, (0, 1, 3, 2)).reshape(9 * cout, cin)

    w0 = taps_2d(params[0][0]).astype(compute_dtype)
    b0 = params[0][1].reshape(-1, 1).astype(jnp.float32)
    wm = jnp.stack([taps_2d(params[li][0]) for li in range(1, depth - 1)]
                   ).astype(compute_dtype)
    bm = jnp.stack([params[li][1].reshape(-1, 1) for li in range(1, depth - 1)]
                   ).astype(jnp.float32)
    wl = taps_2d(params[depth - 1][0]).astype(compute_dtype)
    bl = params[depth - 1][1].reshape(-1, 1).astype(jnp.float32)
    return w0, b0, wm, bm, wl, bl


# ----------------------------------------------------------------------------
# Wrapper: one fused pallas_call for the whole DnCNN forward.
# ----------------------------------------------------------------------------
def dncnn_forward_pallas(x_nchw, params, compute_dtype=jnp.bfloat16):
    N, C, H, W = x_nchw.shape
    depth = len(params)
    assert depth >= 3, "DnCNN needs at least one middle layer"
    F = params[0][0].shape[-1]
    HW = H * W

    roll_sign = _get_roll_sign()

    # Channel-major input, lane-dense spatial axis; fed once (used by layer 0
    # and by the residual subtraction) -- no host transpose needed from NCHW.
    x_flat = x_nchw.reshape(N, C, HW)
    w0, b0, wm, bm, wl, bl = _pack_params(params, compute_dtype)

    kernel = _make_dncnn_kernel(H, W, C, F, depth, compute_dtype, roll_sign)

    out = pl.pallas_call(
        kernel,
        out_shape=jax.ShapeDtypeStruct((N, C, HW), x_nchw.dtype),
        grid_spec=pltpu.PrefetchScalarGridSpec(
            num_scalar_prefetch=0,
            grid=(N,),
            in_specs=[
                pl.BlockSpec((1, C, HW), lambda n: (n, 0, 0)),      # x (per batch)
                pl.BlockSpec(w0.shape, lambda n: (0, 0)),           # (9C->)*F taps
                pl.BlockSpec(b0.shape, lambda n: (0, 0)),
                pl.BlockSpec(wm.shape, lambda n: (0, 0, 0)),        # stacked mid
                pl.BlockSpec(bm.shape, lambda n: (0, 0, 0)),
                pl.BlockSpec(wl.shape, lambda n: (0, 0)),           # last layer
                pl.BlockSpec(bl.shape, lambda n: (0, 0)),
            ],
            out_specs=pl.BlockSpec((1, C, HW), lambda n: (n, 0, 0)),
        ),
        compiler_params=pltpu.CompilerParams(
            dimension_semantics=("parallel",),
            vmem_limit_bytes=48 * 1024 * 1024,
        ),
    )(x_flat, w0, b0, wm, bm, wl, bl)

    return out.reshape(N, C, H, W)


# ----------------------------------------------------------------------------
# DnCNN parameter construction (deterministic) with BatchNorm folded into conv
# ----------------------------------------------------------------------------
def init_dncnn_params(key, channels, features, depth):
    """Returns list of (w_hwio, bias, relu) per layer; BN (eval) is folded."""
    params = []
    dims = [(channels, features)] + [(features, features)] * (depth - 2) + [(features, channels)]
    eps = 1e-4
    for li, (cin, cout) in enumerate(dims):
        key, kw = jax.random.split(key)
        fan_in = 9 * cin
        w = jax.random.normal(kw, (3, 3, cin, cout), jnp.float32) * jnp.sqrt(2.0 / fan_in)
        b = jnp.zeros((cout,), jnp.float32)
        if 0 < li < depth - 1:
            # BatchNorm2d(features), eval semantics, default init -> fold.
            gamma = jnp.ones((cout,), jnp.float32)
            beta = jnp.zeros((cout,), jnp.float32)
            r_mean = jnp.zeros((cout,), jnp.float32)
            r_var = jnp.ones((cout,), jnp.float32)
            s = gamma / jnp.sqrt(r_var + eps)
            w = w * s[None, None, None, :]
            b = (b - r_mean) * s + beta
        params.append((w, b, li < depth - 1))
    return params


# Pure-JAX reference (matmul_dtype=bfloat16 reproduces the kernel's MXU dtype).
def dncnn_forward_ref(x_nchw, params, matmul_dtype=jnp.float32):
    x = jnp.transpose(x_nchw, (0, 2, 3, 1))
    x0 = x
    h = x
    n_layers = len(params)
    for li, (w, b, relu) in enumerate(params):
        y = lax.conv_general_dilated(
            h.astype(matmul_dtype), w.astype(matmul_dtype),
            window_strides=(1, 1), padding="SAME",
            dimension_numbers=("NHWC", "HWIO", "NHWC"),
            preferred_element_type=jnp.float32) + b[None, None, None, :]
        if li == n_layers - 1:
            h = x0 - y
        else:
            h = jnp.maximum(y, 0.0) if relu else y
    return jnp.transpose(h, (0, 3, 1, 2))


if __name__ == "__main__":
    # Small deterministic config: batch=2, channels=4, spatial 16x16,
    # features=16, depth=4 (conv+relu, 2x conv+bn+relu, conv) + residual.
    key = jax.random.PRNGKey(0)
    kx_, kp_ = jax.random.split(key)
    x = jax.random.normal(kx_, (2, 4, 16, 16), jnp.float32)   # NCHW like PyTorch
    params = init_dncnn_params(kp_, channels=4, features=16, depth=4)

    out = jax.block_until_ready(dncnn_forward_pallas(x, params))

    ref_bf16 = dncnn_forward_ref(x, params, matmul_dtype=jnp.bfloat16)  # matched MXU dtype
    ref_f32 = dncnn_forward_ref(x, params)                              # full precision

    assert out.shape == x.shape and out.dtype == x.dtype
    assert jnp.allclose(out, ref_bf16, atol=1e-2, rtol=1e-2), "mismatch vs bf16-matched reference"
    assert jnp.allclose(out, ref_f32, atol=1e-1, rtol=1e-1), "mismatch vs f32 reference"

    print("KERNEL_OK")
</pallas_src>

<mosaic_0001>
module attributes {stable_mosaic.version = 11 : i64} {
  func.func @probe(%arg0: memref<8x128xf32, #tpu.memory_space<vmem>>, %arg1: memref<8x128xf32, #tpu.memory_space<vmem>>) attributes {dimension_semantics = [], scalar_prefetch = 0 : i64, scratch_operands = 0 : i64, tpu.core_type = #tpu.core_type<tc>} {
    %c0 = arith.constant 0 : index
    %c0_0 = arith.constant 0 : index
    %0 = vector.load %arg0[%c0, %c0_0] : memref<8x128xf32, #tpu.memory_space<vmem>>, vector<8x128xf32>
    %c1_i32 = arith.constant 1 : i32
    %1 = tpu.dynamic_rotate %0 by %c1_i32 dim 1 : vector<8x128xf32>, i32 -> vector<8x128xf32>
    %c0_1 = arith.constant 0 : index
    %c0_2 = arith.constant 0 : index
    %2 = vector.load %arg1[%c0_1, %c0_2] : memref<8x128xf32, #tpu.memory_space<vmem>>, vector<8x128xf32>
    tpu.vector_store %arg1[%c0_1, %c0_2], %1 {strides = array<i32>} : memref<8x128xf32, #tpu.memory_space<vmem>>, vector<8x128xf32>,
    return
  }
}

</mosaic_0001>

<bundles_post_ra>
// kernel: tpu_custom_call.1
= control target key start
LH: loop header
LB: loop body
LE: loop exit
PB: predicated region body
PF: predicated region fallthrough
CT: control target
= control target key end

     0   :  { %6 = vsyncpa [#allocation3], 0  ;;  %s128_s0 = inlined_call_operand.hbm [shape: f32[8,128], index: 0, kind: input, shape index: {}]   ;;  %s129_s1 = inlined_call_operand.hbm [shape: f32[8,128], index: 1, kind: output, shape index: {}]  }
   0x1   :  { %7 = vsyncpa [#allocation4], 0  ;;  %s91_s6 = smov [#allocation2]   ;;  %s43_s10 = scalar_lea.hbm %s128_s0, 128 }
   0x2   :  { %s14_s7 = sshll.u32 %s91_s6, 4  ;;  %p44_p0 = scmp.ne.s32.totalorder %s128_s0, %s43_s10  ;;  %s15_s7 = int_to_ptr.vmem [resolvable:$true] %s14_s7 }
   0x3   :  { %p47_p1 = scmp.lt.u32.totalorder %s43_s10, %s128_s0 }
   0x5   :  { %p49_p2 = pnand %p47_p1, %p44_p0 }
   0x7   :  { %52 = shalt.err (!%p49_p2)
}
   0x8   :  { %s53_s15 = scalar_lea.vmem %s15_s7, 128  ;;  %p58_p4 = scmp.lt.s32.totalorder %s15_s7, %s15_s7 }
   0x9   :  { %p54_p3 = scmp.ne.s32.totalorder %s15_s7, %s53_s15  ;;  %p59_p5 = scmp.lt.s32.totalorder %s53_s15, %s53_s15 }
   0xb   :  { %p60_p6 = por %p59_p5, %p58_p4 }
   0xd   :  { %p61_p7 = pnand %p60_p6, %p54_p3 }
   0xf   :  { %64 = shalt.err (!%p61_p7)
}
  0x10   :  { %17 = dma.hbm_to_vmem [thread:$0]  %s128_s0, 128, %s15_s7, [#allocation3]  }
  0x11   :  { %87 = dma.done.wait [#allocation3], 128  }
  0x12   :  { %88 = vsyncadd [#allocation3], 4294967168  ;;  %v21_v0 = vld [vmem:[#allocation2] sm:$0xff]  ;;  %s92_s18 = smov 1   ;;  %s93_s19 = smov [#allocation5]  }
  0x13   :  { %22 = vrot.lane.b32.xlu0 %v21_v0, %s92_s18  ;;  %s31_s20 = sshll.u32 %s93_s19, 4  ;;  %s32_s20 = int_to_ptr.vmem [resolvable:$true] %s31_s20 }
  0x14   :  { %s65_s21 = scalar_lea.vmem %s32_s20, 128  ;;  %p70_p9 = scmp.lt.s32.totalorder %s32_s20, %s32_s20 }
  0x15   :  { %p66_p8 = scmp.ne.s32.totalorder %s32_s20, %s65_s21  ;;  %p71_p10 = scmp.lt.s32.totalorder %s65_s21, %s65_s21 }
  0x17   :  { %p72_p11 = por %p71_p10, %p70_p9 }
  0x19   :  { %p73_p12 = pnand %p72_p11, %p66_p8 }
  0x85   :  { %v23_v1 = vpop.permute.xlu0 %22 }
  0x86   :  { %24 = vst [vmem:[#allocation5] sm:$0xff] %v23_v1 }
  0x87   :  { %76 = shalt.err (!%p73_p12)
}
  0x88   :  { %s77_s0 = scalar_lea.hbm %s129_s1, 128 }
  0x89   :  { %p78_p13 = scmp.ne.s32.totalorder %s129_s1, %s77_s0  ;;  %p81_p0 = scmp.lt.u32.totalorder %s77_s0, %s129_s1 }
  0x8b   :  { %p83_p1 = pnand %p81_p0, %p78_p13 }
  0x8d   :  { %86 = shalt.err (!%p83_p1)
}
  0x8e   :  { %34 = dma.vmem_to_hbm [thread:$0]  %s32_s20, 128, %s129_s1, [#allocation4]  }
  0x8f   :  { %89 = dma.done.wait [#allocation4], 128  }
  0x90   :  { %90 = vsyncadd [#allocation4], 4294967168 }
  0x91   :  { %38 = vsyncpa [#allocation3], 1 }
  0x92   :  { %39 = vsyncpa [#allocation4], 1 }

</bundles_post_ra>
